<compile_context>
chip_gen: v7x
topology: tpu7x:2x2x1
jax: 0.10.0
libtpu: 0.0.40
codegen_flags: <defaults>
</compile_context>

<pallas_src>
import functools

import jax
import jax.numpy as jnp
from jax.experimental import pallas as pl
from jax.experimental.pallas import tpu as pltpu


def _make_max_planes_kernel(k):
    """out = elementwise max over the k leading planes of the slab block."""

    def kernel(slab_ref, out_ref):        # slab_ref: (k, tr, tl), out_ref: (tr, tl)
        m = slab_ref[0]
        for t in range(1, k):             # k is a small static Python int
            m = jnp.maximum(m, slab_ref[t])
        out_ref[...] = m

    return kernel


def _pick_tiles(rows, out_len, tile_rows, tile_len):
    """Block sizes honoring the (8,128) rule; split work for v7x's two TCs."""
    tr = rows if rows <= tile_rows else (tile_rows // 8) * 8
    tl = out_len if out_len <= tile_len else (tile_len // 128) * 128
    # v7x has two TensorCores: give a "parallel" grid axis >= 2 blocks whenever the
    # problem is large enough to split (no effect on single-core v5e / v6e).
    if pl.cdiv(rows, tr) == 1 and pl.cdiv(out_len, tl) == 1:
        if out_len >= 256:
            tl = max(128, (pl.cdiv(out_len, 2) // 128) * 128)
        elif rows >= 16:
            tr = max(8, (pl.cdiv(rows, 2) // 8) * 8)
    return tr, tl


def maxpool1d_pad_same(x, kernel_size, *, tile_rows=256, tile_len=1024):
    """JAX/Pallas equivalent of MyMaxPool1dPadSame(kernel_size)(x); x is (N, C, L)."""
    k = int(kernel_size)
    assert k >= 1
    stride = 1                                 # only used for the SAME-pad amount
    n, c, L = x.shape
    out_dim_same = (L + stride - 1) // stride
    p = max(0, (out_dim_same - 1) * stride + k - L)
    pad_left = p // 2
    pad_right = p - pad_left
    out_len = (L + p - k) // k + 1             # MaxPool1d default: stride=k, floor

    rows = n * c
    x2 = x.reshape(rows, L)

    # Constant-0 SAME padding (faithful to F.pad in the PyTorch module: edge windows
    # can return 0 when every real value inside them is negative) + stride-k window
    # de-interleave, materialised ONCE as a single slab:
    #     slab[t, r, j] = xp[r, j*k + t]
    # so the Pallas kernel only ever touches dense, lane-contiguous planes.
    xp = jnp.pad(x2, ((0, 0), (pad_left, pad_right)), constant_values=0)
    slab = jnp.transpose(xp[:, : out_len * k].reshape(rows, out_len, k), (2, 0, 1))

    tr, tl = _pick_tiles(rows, out_len, tile_rows, tile_len)
    grid = (pl.cdiv(rows, tr), pl.cdiv(out_len, tl))

    itemsize = jnp.dtype(x.dtype).itemsize
    # Double-buffered input block + output block; 8 MiB at f32 defaults.
    vmem_need = 2 * (k + 1) * tr * tl * itemsize
    vmem_limit = int(max(32 * 1024 * 1024, min(2 * vmem_need, 64 * 1024 * 1024)))

    cost = pl.CostEstimate(
        flops=int(rows) * int(out_len) * (k - 1),
        transcendentals=0,
        bytes_accessed=(k + 1) * int(rows) * int(out_len) * itemsize,
    )

    out = pl.pallas_call(
        _make_max_planes_kernel(k),
        out_shape=jax.ShapeDtypeStruct((rows, out_len), x.dtype),
        grid_spec=pltpu.PrefetchScalarGridSpec(
            num_scalar_prefetch=0,
            grid=grid,
            in_specs=[pl.BlockSpec((k, tr, tl), lambda i, j: (0, i, j))],
            out_specs=pl.BlockSpec((tr, tl), lambda i, j: (i, j)),
        ),
        compiler_params=pltpu.CompilerParams(
            dimension_semantics=("parallel", "parallel"),
            vmem_limit_bytes=vmem_limit,
        ),
        cost_estimate=cost,
    )(slab)
    return out.reshape(n, c, out_len)


def _reference(x, kernel_size):
    # Pure-JAX reference mirroring the PyTorch forward exactly.
    stride = 1
    n, c, L = x.shape
    out_dim = (L + stride - 1) // stride
    p = max(0, (out_dim - 1) * stride + kernel_size - L)
    pad_left = p // 2
    pad_right = p - pad_left
    xp = jnp.pad(x, ((0, 0), (0, 0), (pad_left, pad_right)), constant_values=0)
    out_len = (L + p - kernel_size) // kernel_size + 1
    xw = xp[..., : out_len * kernel_size].reshape(n, c, out_len, kernel_size)
    return jnp.max(xw, axis=-1)


if __name__ == "__main__":
    kernel_size = 3        # deterministic hyper-parameter (module has no weights)
    pool = jax.jit(functools.partial(maxpool1d_pad_same, kernel_size=kernel_size))

    # Small NCL input consistent with the 1-D signal model: batch=2, channels=4, length=16.
    x = jax.random.normal(jax.random.PRNGKey(0), (2, 4, 16), dtype=jnp.float32)
    y = jax.block_until_ready(pool(x))
    y_ref = _reference(x, kernel_size)
    assert y.shape == y_ref.shape, (y.shape, y_ref.shape)
    assert jnp.allclose(y, y_ref), "Pallas max-pool mismatch vs reference (small f32)"

    # Multi-block grid (partial edge block on the lane axis) at a realistic ECG length.
    x_big = jax.random.normal(jax.random.PRNGKey(1), (2, 4, 4096), dtype=jnp.float32)
    y_big = jax.block_until_ready(pool(x_big))
    y_big_ref = _reference(x_big, kernel_size)
    assert y_big.shape == y_big_ref.shape, (y_big.shape, y_big_ref.shape)
    assert jnp.allclose(y_big, y_big_ref), "Pallas max-pool mismatch vs reference (tiled f32)"

    # bf16 end-to-end (review item: halves HBM traffic on a purely mem-bound op).
    x_bf16 = x.astype(jnp.bfloat16)
    y_bf16 = jax.block_until_ready(pool(x_bf16))
    y_bf16_ref = _reference(x_bf16, kernel_size)
    assert y_bf16.dtype == jnp.bfloat16
    assert jnp.allclose(y_bf16.astype(jnp.float32), y_bf16_ref.astype(jnp.float32)), \
        "Pallas max-pool mismatch vs reference (bf16)"

    print("KERNEL_OK")
</pallas_src>

<mosaic_0001>
module attributes {stable_mosaic.version = 11 : i64} {
  func.func @kernel(%arg0: i32, %arg1: i32, %arg2: memref<3x8x6xf32, #tpu.memory_space<vmem>>, %arg3: memref<8x6xf32, #tpu.memory_space<vmem>>) attributes {dimension_semantics = [#tpu.dimension_semantics<parallel>, #tpu.dimension_semantics<parallel>], iteration_bounds = array<i64: 1, 1>, scalar_prefetch = 0 : i64, scratch_operands = 0 : i64, tpu.core_type = #tpu.core_type<tc>, window_params = [{transform_indices = @transform_0, window_bounds = array<i64: 3, 8, 6>}, {transform_indices = @transform_1, window_bounds = array<i64: 8, 6>}]} {
    %c0 = arith.constant 0 : index
    %c0_0 = arith.constant 0 : index
    %c0_1 = arith.constant 0 : index
    %0 = vector.load %arg2[%c0, %c0_0, %c0_1] : memref<3x8x6xf32, #tpu.memory_space<vmem>>, vector<1x8x6xf32>
    %1 = vector.shape_cast %0 : vector<1x8x6xf32> to vector<8x6xf32>
    %c1 = arith.constant 1 : index
    %c0_2 = arith.constant 0 : index
    %c0_3 = arith.constant 0 : index
    %2 = vector.load %arg2[%c1, %c0_2, %c0_3] : memref<3x8x6xf32, #tpu.memory_space<vmem>>, vector<1x8x6xf32>
    %3 = vector.shape_cast %2 : vector<1x8x6xf32> to vector<8x6xf32>
    %4 = arith.maximumf %1, %3 : vector<8x6xf32>
    %c2 = arith.constant 2 : index
    %c0_4 = arith.constant 0 : index
    %c0_5 = arith.constant 0 : index
    %5 = vector.load %arg2[%c2, %c0_4, %c0_5] : memref<3x8x6xf32, #tpu.memory_space<vmem>>, vector<1x8x6xf32>
    %6 = vector.shape_cast %5 : vector<1x8x6xf32> to vector<8x6xf32>
    %7 = arith.maximumf %4, %6 : vector<8x6xf32>
    %c0_6 = arith.constant 0 : index
    %c0_7 = arith.constant 0 : index
    %8 = vector.load %arg3[%c0_6, %c0_7] : memref<8x6xf32, #tpu.memory_space<vmem>>, vector<8x6xf32>
    tpu.vector_store %arg3[%c0_6, %c0_7], %7 {strides = array<i32>} : memref<8x6xf32, #tpu.memory_space<vmem>>, vector<8x6xf32>,
    return
  }
  func.func @transform_0(%arg0: i32, %arg1: i32) -> (i32, i32, i32) {
    %c0_i32 = arith.constant 0 : i32
    %c0_i32_0 = arith.constant 0 : i32
    return %c0_i32, %arg0, %arg1 : i32, i32, i32
  }
  func.func @transform_1(%arg0: i32, %arg1: i32) -> (i32, i32) {
    %c0_i32 = arith.constant 0 : i32
    return %arg0, %arg1 : i32, i32
  }
}

</mosaic_0001>

<bundles_post_ra>
// kernel: maxpool1d_pad_same.1
= control target key start
LH: loop header
LB: loop body
LE: loop exit
PB: predicated region body
PF: predicated region fallthrough
CT: control target
= control target key end

     0   :  { %s91_s0 = inlined_call_operand.vmem [shape: f32[3,8,6], index: 0, kind: input, shape index: {}]   ;;  %s92_s1 = inlined_call_operand.hbm [shape: f32[8,6], index: 1, kind: output, shape index: {}]  }
   0x1   :  { %v9_v0 = vld [vmem:[%s91_s0] sm:$0xff]  ;;  %v32_v1 = vld [vmem:[%s91_s0 + $0x8] sm:$0xff]  ;;  %v33_v2 = vld [vmem:[%s91_s0 + $0x10] sm:$0xff] }
   0x2   :  { %v12_v3 = vmax.f32 %v9_v0, %v32_v1 }
   0x3   :  { %6 = vsyncpa [#allocation3], 0  ;;  %s59_s12 = smov [#allocation2]   ;;  %vm16_vm0 = vcmask 48128  }
   0x4   :  { %s24_s13 = sshll.u32 %s59_s12, 4  ;;  %v15_v4 = vmax.f32 %v12_v3, %v33_v2  ;;  %s25_s13 = int_to_ptr.vmem [resolvable:$true] %s24_s13 }
   0x5   :  { %s35_s14 = scalar_lea.vmem %s25_s13, 128  ;;  %p40_p1 = scmp.lt.s32.totalorder %s25_s13, %s25_s13 }
   0x6   :  { %17 = vst.msk [vmem:[#allocation2] sm:$0xff] %vm16_vm0, %v15_v4  ;;  %p36_p0 = scmp.ne.s32.totalorder %s25_s13, %s35_s14  ;;  %p41_p2 = scmp.lt.s32.totalorder %s35_s14, %s35_s14 }
   0x8   :  { %p42_p3 = por %p41_p2, %p40_p1 }
   0xa   :  { %p43_p4 = pnand %p42_p3, %p36_p0 }
   0xc   :  { %46 = shalt.err (!%p43_p4)
}
   0xd   :  { %s47_s17 = scalar_lea.hbm %s92_s1, 128 }
   0xe   :  { %p48_p5 = scmp.ne.s32.totalorder %s92_s1, %s47_s17  ;;  %p51_p6 = scmp.lt.u32.totalorder %s47_s17, %s92_s1 }
  0x10   :  { %p53_p7 = pnand %p51_p6, %p48_p5 }
  0x12   :  { %56 = shalt.err (!%p53_p7)
}
  0x13   :  { %27 = dma.vmem_to_hbm [thread:$0]  %s25_s13, 128, %s92_s1, [#allocation3]  }
  0x14   :  { %57 = dma.done.wait [#allocation3], 128  }
  0x15   :  { %58 = vsyncadd [#allocation3], 4294967168 }
  0x16   :  { %31 = vsyncpa [#allocation3], 1 }

</bundles_post_ra>
